<compile_context>
chip_gen: v5e
topology: v5e:2x2
jax: 0.10.0
libtpu: 0.0.40
codegen_flags: <defaults>
</compile_context>

<pallas_src>
import math
import functools

import numpy as np
import jax
import jax.numpy as jnp
from jax.experimental import pallas as pl
from jax.experimental.pallas import tpu as pltpu


# ----------------------------------------------------------------------------
# small helpers
# ----------------------------------------------------------------------------
def _round_up(v, m):
    return ((v + m - 1) // m) * m


def bbox_iou_np(box1, box2, x1y1x2y2=True):
    if x1y1x2y2:
        mx = min(box1[0], box2[0]); Mx = max(box1[2], box2[2])
        my = min(box1[1], box2[1]); My = max(box1[3], box2[3])
        w1 = box1[2] - box1[0]; h1 = box1[3] - box1[1]
        w2 = box2[2] - box2[0]; h2 = box2[3] - box2[1]
    else:
        mx = min(box1[0] - box1[2] / 2.0, box2[0] - box2[2] / 2.0)
        Mx = max(box1[0] + box1[2] / 2.0, box2[0] + box2[2] / 2.0)
        my = min(box1[1] - box1[3] / 2.0, box2[1] - box2[3] / 2.0)
        My = max(box1[1] + box1[3] / 2.0, box2[1] + box2[3] / 2.0)
        w1, h1, w2, h2 = box1[2], box1[3], box2[2], box2[3]
    uw = Mx - mx; uh = My - my
    cw = w1 + w2 - uw; ch = h1 + h2 - uh
    if cw <= 0 or ch <= 0:
        return 0.0
    carea = cw * ch
    uarea = w1 * h1 + w2 * h2 - carea
    return float(carea / uarea)


def _sigmoid(z):
    # single-EUP sigmoid (exact math, one tanh push instead of exp + divide)
    return 0.5 * (jnp.tanh(0.5 * z) + 1.0)


def _iou_cxcywh(ax, ay, aw, ah, bx, by, bw, bh):
    mnx = jnp.minimum(ax - aw * 0.5, bx - bw * 0.5)
    mxx = jnp.maximum(ax + aw * 0.5, bx + bw * 0.5)
    mny = jnp.minimum(ay - ah * 0.5, by - bh * 0.5)
    mxy = jnp.maximum(ay + ah * 0.5, by + bh * 0.5)
    cw = aw + bw - (mxx - mnx)
    ch = ah + bh - (mxy - mny)
    carea = jnp.where((cw <= 0) | (ch <= 0), 0.0, cw * ch)
    uarea = aw * ah + bw * bh - carea
    return carea / jnp.maximum(uarea, 1e-12)


def _choose_tiling(n_rows, bytes_per_row, budget_bytes):
    """Largest sublane-aligned row-block whose double-buffered working set
    fits the VMEM budget, keeping >= 2 grid blocks when there is enough work
    (v7x has 2 TensorCores)."""
    br_cap = max(8, (budget_bytes // (2 * bytes_per_row)) // 8 * 8)
    n_blocks = max(1, -(-n_rows // br_cap))
    if n_blocks == 1 and n_rows > 8:
        n_blocks = 2
    br = max(8, _round_up(-(-n_rows // n_blocks), 8))
    return int(br), int(n_blocks), int(br * n_blocks)


# ----------------------------------------------------------------------------
# Pallas kernel 1: decode raw output -> stacked pred-box planes (px,py,pw,ph)
#   o_ref : (4, BR, 128)   channels 0..3 of the channel-major raw output
#   c_ref : (4, BR, 128)   stacked grid_x, grid_y, anchor_w, anchor_h
#   p_ref : (4, BR, 128)   stacked px, py, pw, ph
# ----------------------------------------------------------------------------
def decode_kernel(o_ref, c_ref, p_ref):
    f32 = jnp.float32
    p_ref[0] = _sigmoid(o_ref[0].astype(f32)) + c_ref[0]
    p_ref[1] = _sigmoid(o_ref[1].astype(f32)) + c_ref[1]
    p_ref[2] = jnp.exp(o_ref[2].astype(f32)) * c_ref[2]
    p_ref[3] = jnp.exp(o_ref[3].astype(f32)) * c_ref[3]


# target-plane channel order inside the stacked (9, NR, 128) tensor
_CM, _CFS, _TX, _TY, _TW, _TH, _TCONF, _TCLS, _CLSM = range(9)


# ----------------------------------------------------------------------------
# Pallas kernel 2: fused activation decode + masked-MSE + cross-entropy.
# Emits one lane-dense per-block partial (summed outside).
#   o_ref : (5+nC, BR, 128) channel-major raw output
#   t_ref : (9, BR, 128)    stacked target planes
# ----------------------------------------------------------------------------
def loss_kernel(o_ref, t_ref, out_ref, *, nC, coord_scale, class_scale):
    f32 = jnp.float32
    cm = t_ref[_CM]

    x = _sigmoid(o_ref[0].astype(f32))
    y = _sigmoid(o_ref[1].astype(f32))
    w = o_ref[2].astype(f32)
    h = o_ref[3].astype(f32)
    conf = _sigmoid(o_ref[4].astype(f32))

    def msse(a, t_idx):
        d = (a - t_ref[t_idx]) * cm
        return jnp.sum(d * d)

    lx = msse(x, _TX)
    ly = msse(y, _TY)
    lw = msse(w, _TW)
    lh = msse(h, _TH)

    dc = (conf - t_ref[_TCONF]) * t_ref[_CFS]      # t_ref[_CFS] = sqrt(conf_mask)
    lconf = jnp.sum(dc * dc)

    if nC > 0:
        # Streaming two-pass logsumexp: only running (BR,128) temporaries stay
        # live; logits are re-read from the VMEM block (3 vld/cycle is cheap),
        # so no register spills even for large nC.
        # TODO(synk): for very large nC a sparse (selected-cells-only) CE would
        # further cut EUP exp pushes (mainly a v7x win).
        mx = o_ref[5].astype(f32)
        for c in range(1, nC):
            mx = jnp.maximum(mx, o_ref[5 + c].astype(f32))
        lbl = t_ref[_TCLS]
        s = jnp.zeros_like(mx)
        picked = jnp.zeros_like(mx)
        for c in range(nC):
            z = o_ref[5 + c].astype(f32)
            s = s + jnp.exp(z - mx)
            picked = picked + jnp.where(lbl == float(c), z, 0.0)
        lcls = jnp.sum(t_ref[_CLSM] * ((mx + jnp.log(s)) - picked))
    else:
        lcls = jnp.float32(0.0)

    total = (coord_scale * 0.5 * (lx + ly + lw + lh)
             + 0.5 * lconf + class_scale * lcls)
    out_ref[...] = jnp.full((1, 8, 128), total, dtype=f32)


# ----------------------------------------------------------------------------
# Wrapper: RegionLoss.forward
# ----------------------------------------------------------------------------
def region_loss_forward(output, target_np, anchors, num_anchors, num_classes,
                        coord_scale=1.0, noobject_scale=1.0, object_scale=5.0,
                        class_scale=1.0, thresh=0.6, seen=0):
    output = jnp.asarray(output)
    nB = int(output.shape[0])
    nH = int(output.shape[2])
    nW = int(output.shape[3])
    nA = int(num_anchors)
    nC = int(num_classes)
    C5 = 5 + nC
    HW = nH * nW
    nBA = nB * nA
    N = nBA * HW
    anchor_step = len(anchors) // nA
    anchors_arr = np.asarray(anchors, np.float32).reshape(nA, anchor_step)

    # ---- generation-aware tiling --------------------------------------------
    NR = -(-N // 128)
    o_isz = jnp.dtype(output.dtype).itemsize
    bytes_per_row = (C5 * o_isz + 9 * 4) * 128           # loss kernel dominates
    try:
        vmem_cap = int(pltpu.get_tpu_info().vmem_capacity_bytes)
    except Exception:
        vmem_cap = 64 * 1024 * 1024                       # v7x-conservative
    budget = min(int(vmem_cap * 0.45), 48 * 1024 * 1024)  # double-buffered inputs
    vmem_limit = int(min(vmem_cap * 3 // 4, 100 * 1024 * 1024))
    BR, n_blocks, NRp = _choose_tiling(NR, bytes_per_row, budget)
    Npad = NRp * 128

    cp = pltpu.CompilerParams(dimension_semantics=("parallel",),
                              vmem_limit_bytes=vmem_limit)

    # ---- stacked grid/anchor constants (4, NRp, 128) ------------------------
    n_idx = np.arange(Npad, dtype=np.int64)
    p_pos = n_idx % HW
    a_pos = ((n_idx // HW) % nBA) % nA
    consts = np.stack([
        (p_pos % nW).astype(np.float32),
        (p_pos // nW).astype(np.float32),
        anchors_arr[a_pos, 0],
        anchors_arr[a_pos, 1],
    ]).astype(np.float32).reshape(4, NRp, 128)

    # ---- pallas calls --------------------------------------------------------
    decode_call = pl.pallas_call(
        decode_kernel,
        grid=(n_blocks,),
        in_specs=[pl.BlockSpec((4, BR, 128), lambda i: (0, i, 0)),
                  pl.BlockSpec((4, BR, 128), lambda i: (0, i, 0))],
        out_specs=pl.BlockSpec((4, BR, 128), lambda i: (0, i, 0)),
        out_shape=jax.ShapeDtypeStruct((4, NRp, 128), jnp.float32),
        compiler_params=cp,
    )
    loss_call = pl.pallas_call(
        functools.partial(loss_kernel, nC=nC,
                          coord_scale=float(coord_scale),
                          class_scale=float(class_scale)),
        grid=(n_blocks,),
        in_specs=[pl.BlockSpec((C5, BR, 128), lambda i: (0, i, 0)),
                  pl.BlockSpec((9, BR, 128), lambda i: (0, i, 0))],
        out_specs=pl.BlockSpec((1, 8, 128), lambda i: (i, 0, 0)),
        out_shape=jax.ShapeDtypeStruct((n_blocks, 8, 128), jnp.float32),
        compiler_params=cp,
    )

    # ---- host: parse GT, pick best anchors, build sparse assignment ---------
    tgt = np.asarray(target_np, np.float32).reshape(nB, -1)
    nGTmax = 50 * nB
    qi = np.zeros(nGTmax, np.int32)
    pi = np.zeros(nGTmax, np.int32)
    scat_idx = np.full(nGTmax, N, np.int32)           # N == dump slot
    gt_per = np.zeros((nGTmax, 4), np.float32)
    txv = np.zeros(nGTmax, np.float32)
    tyv = np.zeros(nGTmax, np.float32)
    twv = np.zeros(nGTmax, np.float32)
    thv = np.zeros(nGTmax, np.float32)
    clsv = np.zeros(nGTmax, np.float32)
    gtb = np.zeros((nB, 50, 4), np.float32)
    gtv = np.zeros((nB, 50), np.float32)
    gt_meta = []
    g = 0
    for b in range(nB):
        for t in range(50):
            if tgt[b, t * 5 + 1] == 0:
                break
            gc = float(tgt[b, t * 5 + 0])
            gxg = float(tgt[b, t * 5 + 1]) * nW
            gyg = float(tgt[b, t * 5 + 2]) * nH
            gwg = float(tgt[b, t * 5 + 3]) * nW
            ghg = float(tgt[b, t * 5 + 4]) * nH
            gtb[b, t] = (gxg, gyg, gwg, ghg)
            gtv[b, t] = 1.0
            best_iou, best_n = 0.0, -1
            for n in range(nA):
                iou = bbox_iou_np([0, 0, anchors_arr[n, 0], anchors_arr[n, 1]],
                                  [0, 0, gwg, ghg], x1y1x2y2=False)
                if iou > best_iou:
                    best_iou, best_n = iou, n
            if best_n < 0:
                best_n = nA - 1   # torch's negative-index mask write, made consistent
            gi, gj = int(gxg), int(gyg)
            q = b * nA + best_n
            p = gj * nW + gi
            qi[g] = q
            pi[g] = p
            scat_idx[g] = q * HW + p
            gt_per[g] = (gxg, gyg, gwg, ghg)
            txv[g] = gxg - gi
            tyv[g] = gyg - gj
            twv[g] = math.log(gwg / anchors_arr[best_n, 0])
            thv[g] = math.log(ghg / anchors_arr[best_n, 1])
            clsv[g] = gc
            gt_meta.append((b, best_n, gj, gi, gc,
                            txv[g], tyv[g], twv[g], thv[g]))
            g += 1
    nGT = g
    # duplicate cells: keep only the last GT's scatter (= the Python loop's
    # last-write-wins) by redirecting earlier duplicates to the dump slot.
    last = {}
    for k in range(nGT):
        last[int(scat_idx[k])] = k
    for k in range(nGT):
        if last[int(scat_idx[k])] != k:
            scat_idx[k] = N

    seen_lt = seen < 12800
    # TODO(synk): anchor_step == 4 variant (per-anchor tx/ty bias) not ported.

    # ---- device tail: decode -> suppression -> target planes -> loss --------
    def device_tail(out_raw, consts_d, gtb_d, gtv_d, qi_d, pi_d, scat_d,
                    gt_per_d, txv_d, tyv_d, twv_d, thv_d, clsv_d):
        f32 = jnp.float32
        o4 = out_raw.reshape(nB, nA, C5, HW)
        o_cm = jnp.transpose(o4, (2, 0, 1, 3)).reshape(C5, N)
        # TODO(synk): emit the channel-major (C5, nBA*HW) layout directly from
        # the upstream conv (or via allow_input_fusion) to drop this pass.
        o_cm = jnp.pad(o_cm, ((0, 0), (0, Npad - N))).reshape(C5, NRp, 128)

        pred = decode_call(o_cm, consts_d)                    # (4, NRp, 128)
        predf = pred.reshape(4, Npad)[:, :N]
        predr = predf.reshape(4, nBA, HW)

        # GT suppression: IoU of every pred box vs every GT of its image
        pb = predf.reshape(4, nB, nA * HW)
        iou_all = _iou_cxcywh(pb[0][..., None], pb[1][..., None],
                              pb[2][..., None], pb[3][..., None],
                              gtb_d[:, None, :, 0], gtb_d[:, None, :, 1],
                              gtb_d[:, None, :, 2], gtb_d[:, None, :, 3])
        iou_all = jnp.where(gtv_d[:, None, :] > 0, iou_all, 0.0)
        suppress = jnp.max(iou_all, axis=-1) > thresh         # (nB, nA*HW)

        # per-GT IoU(gt, pred at assigned cell) -> tconf / nCorrect
        sel = predr[:, qi_d, pi_d]                            # (4, nGTmax)
        iou_gt = _iou_cxcywh(gt_per_d[:, 0], gt_per_d[:, 1],
                             gt_per_d[:, 2], gt_per_d[:, 3],
                             sel[0], sel[1], sel[2], sel[3])

        # dense target planes built on device from the sparse assignment
        def scat(base, vals):
            buf = jnp.concatenate([base, jnp.zeros((1,), f32)])
            return buf.at[scat_d].set(vals)[:-1]

        noobj = noobject_scale * (1.0 - suppress.reshape(-1).astype(f32))
        conf_mask = scat(noobj, float(object_scale))
        coord_mask = scat(jnp.full((N,), 1.0 if seen_lt else 0.0, f32), 1.0)
        tx_p = scat(jnp.full((N,), 0.5 if seen_lt else 0.0, f32), txv_d)
        ty_p = scat(jnp.full((N,), 0.5 if seen_lt else 0.0, f32), tyv_d)
        tw_p = scat(jnp.zeros((N,), f32), twv_d)
        th_p = scat(jnp.zeros((N,), f32), thv_d)
        tconf_p = scat(jnp.zeros((N,), f32), iou_gt)
        tcls_p = scat(jnp.zeros((N,), f32), clsv_d)
        clsm_p = scat(jnp.zeros((N,), f32), 1.0)

        tgt9 = jnp.stack([coord_mask, jnp.sqrt(conf_mask), tx_p, ty_p,
                          tw_p, th_p, tconf_p, tcls_p, clsm_p], axis=0)
        tgt9 = jnp.pad(tgt9, ((0, 0), (0, Npad - N))).reshape(9, NRp, 128)

        partials = loss_call(o_cm, tgt9)                      # (n_blocks, 8, 128)
        loss = jnp.sum(partials[:, 0, 0])

        n_prop = jnp.sum(_sigmoid(o_cm.reshape(C5, Npad)[4, :N]) > 0.25)
        return loss, suppress, iou_gt, n_prop

    tail = jax.jit(device_tail)
    loss_d, suppress_d, iou_gt_d, nprop_d = tail(
        output, jnp.asarray(consts), jnp.asarray(gtb), jnp.asarray(gtv),
        jnp.asarray(qi), jnp.asarray(pi), jnp.asarray(scat_idx),
        jnp.asarray(gt_per), jnp.asarray(txv), jnp.asarray(tyv),
        jnp.asarray(twv), jnp.asarray(thv), jnp.asarray(clsv))

    # ---- host aux (mirrors the reference build_targets return values) -------
    suppress = np.asarray(suppress_d).reshape(nB, nA, nH, nW)
    iou_np = np.asarray(iou_gt_d)
    conf_mask = np.where(suppress, 0.0, noobject_scale).astype(np.float32)
    coord_mask = np.zeros((nB, nA, nH, nW), np.float32)
    cls_mask = np.zeros((nB, nA, nH, nW), np.float32)
    tx = np.zeros((nB, nA, nH, nW), np.float32)
    ty = np.zeros_like(tx); tw = np.zeros_like(tx); th = np.zeros_like(tx)
    tconf = np.zeros_like(tx); tcls = np.zeros_like(tx)
    if seen_lt:
        tx.fill(0.5); ty.fill(0.5); coord_mask.fill(1.0)
    nCorrect = 0
    for k, (b, best_n, gj, gi, gc, txs, tys, tws, ths) in enumerate(gt_meta):
        coord_mask[b, best_n, gj, gi] = 1.0
        cls_mask[b, best_n, gj, gi] = 1.0
        conf_mask[b, best_n, gj, gi] = object_scale
        tx[b, best_n, gj, gi] = txs
        ty[b, best_n, gj, gi] = tys
        tw[b, best_n, gj, gi] = tws
        th[b, best_n, gj, gi] = ths
        tconf[b, best_n, gj, gi] = iou_np[k]
        tcls[b, best_n, gj, gi] = gc
        if iou_np[k] > 0.5:
            nCorrect += 1

    aux = dict(coord_mask=coord_mask, conf_mask=conf_mask, cls_mask=cls_mask,
               tx=tx, ty=ty, tw=tw, th=th, tconf=tconf, tcls=tcls,
               nGT=nGT, nCorrect=nCorrect, nProposals=int(nprop_d))
    return loss_d, aux


# ----------------------------------------------------------------------------
# independent host (float64) reference of the loss arithmetic
# ----------------------------------------------------------------------------
def reference_loss(output_np, aux, num_anchors, num_classes,
                   coord_scale=1.0, class_scale=1.0):
    nB, _, nH, nW = output_np.shape
    nA, nC = num_anchors, num_classes
    HW = nH * nW
    o = output_np.reshape(nB, nA, 5 + nC, HW).astype(np.float64)
    sig = lambda z: 1.0 / (1.0 + np.exp(-z))
    x = sig(o[:, :, 0]); y = sig(o[:, :, 1])
    w = o[:, :, 2]; h = o[:, :, 3]; conf = sig(o[:, :, 4])
    rs = lambda a: a.reshape(nB, nA, HW).astype(np.float64)
    cm = rs(aux["coord_mask"])
    lx = coord_scale * np.sum((x * cm - rs(aux["tx"]) * cm) ** 2) / 2.0
    ly = coord_scale * np.sum((y * cm - rs(aux["ty"]) * cm) ** 2) / 2.0
    lw = coord_scale * np.sum((w * cm - rs(aux["tw"]) * cm) ** 2) / 2.0
    lh = coord_scale * np.sum((h * cm - rs(aux["th"]) * cm) ** 2) / 2.0
    cfs = np.sqrt(rs(aux["conf_mask"]))
    lconf = np.sum((conf * cfs - rs(aux["tconf"]) * cfs) ** 2) / 2.0
    logits = np.transpose(o[:, :, 5:5 + nC], (0, 1, 3, 2)).reshape(-1, nC)
    sel = aux["cls_mask"].reshape(-1) == 1
    lab = aux["tcls"].reshape(-1)[sel].astype(np.int64)
    lg = logits[sel]
    if lg.shape[0]:
        m = lg.max(axis=1, keepdims=True)
        lse = m[:, 0] + np.log(np.exp(lg - m).sum(axis=1))
        lcls = class_scale * np.sum(lse - lg[np.arange(len(lab)), lab])
    else:
        lcls = 0.0
    return lx + ly + lw + lh + lconf + lcls


if __name__ == "__main__":
    nB, nA, nC, nH, nW = 2, 5, 3, 16, 16
    anchors = [1.08, 1.19, 3.42, 4.41, 6.63, 11.38, 9.42, 5.11, 16.62, 10.52]

    key = jax.random.PRNGKey(0)
    output = 0.5 * jax.random.normal(key, (nB, nA * (5 + nC), nH, nW),
                                     dtype=jnp.float32)

    # Ground-truth targets: (nB, 50*5), each box = (class, cx, cy, w, h) normalized.
    target = np.zeros((nB, 250), np.float32)
    gt = {0: [(1.0, 0.30, 0.40, 0.20, 0.25), (2.0, 0.65, 0.55, 0.30, 0.35)],
          1: [(0.0, 0.45, 0.70, 0.25, 0.15)]}
    for b, boxes in gt.items():
        for t, box in enumerate(boxes):
            target[b, t * 5:t * 5 + 5] = box

    loss, aux = region_loss_forward(output, target, anchors,
                                    num_anchors=nA, num_classes=nC)
    loss = jax.block_until_ready(loss)

    ref = reference_loss(np.asarray(output), aux, nA, nC)
    assert np.allclose(float(loss), ref, rtol=1e-3, atol=1e-2), (float(loss), ref)
    print("KERNEL_OK")
</pallas_src>

<mosaic_0001>
module attributes {stable_mosaic.version = 11 : i64} {
  func.func @decode_kernel(%arg0: i32, %arg1: memref<4x16x128xf32, #tpu.memory_space<vmem>>, %arg2: memref<4x16x128xf32, #tpu.memory_space<vmem>>, %arg3: memref<4x16x128xf32, #tpu.memory_space<vmem>>) attributes {dimension_semantics = [#tpu.dimension_semantics<parallel>], iteration_bounds = array<i64: 2>, scalar_prefetch = 0 : i64, scratch_operands = 0 : i64, tpu.core_type = #tpu.core_type<tc>, window_params = [{transform_indices = @transform_0, window_bounds = array<i64: 4, 16, 128>}, {transform_indices = @transform_1, window_bounds = array<i64: 4, 16, 128>}, {transform_indices = @transform_2, window_bounds = array<i64: 4, 16, 128>}]} {
    %c0 = arith.constant 0 : index
    %c0_0 = arith.constant 0 : index
    %c0_1 = arith.constant 0 : index
    %0 = vector.load %arg1[%c0, %c0_0, %c0_1] : memref<4x16x128xf32, #tpu.memory_space<vmem>>, vector<1x16x128xf32>
    %1 = vector.shape_cast %0 : vector<1x16x128xf32> to vector<16x128xf32>
    %cst = arith.constant 5.000000e-01 : f32
    %2 = vector.broadcast %cst : f32 to vector<16x128xf32>
    %3 = arith.mulf %2, %1 : vector<16x128xf32>
    %4 = math.tanh %3 : vector<16x128xf32>
    %cst_2 = arith.constant 1.000000e+00 : f32
    %5 = vector.broadcast %cst_2 : f32 to vector<16x128xf32>
    %6 = arith.addf %4, %5 : vector<16x128xf32>
    %cst_3 = arith.constant 5.000000e-01 : f32
    %7 = vector.broadcast %cst_3 : f32 to vector<16x128xf32>
    %8 = arith.mulf %7, %6 : vector<16x128xf32>
    %c0_4 = arith.constant 0 : index
    %c0_5 = arith.constant 0 : index
    %c0_6 = arith.constant 0 : index
    %9 = vector.load %arg2[%c0_4, %c0_5, %c0_6] : memref<4x16x128xf32, #tpu.memory_space<vmem>>, vector<1x16x128xf32>
    %10 = vector.shape_cast %9 : vector<1x16x128xf32> to vector<16x128xf32>
    %11 = arith.addf %8, %10 : vector<16x128xf32>
    %c0_7 = arith.constant 0 : index
    %c0_8 = arith.constant 0 : index
    %c0_9 = arith.constant 0 : index
    %12 = vector.load %arg3[%c0_7, %c0_8, %c0_9] : memref<4x16x128xf32, #tpu.memory_space<vmem>>, vector<1x16x128xf32>
    %13 = vector.shape_cast %12 : vector<1x16x128xf32> to vector<16x128xf32>
    %14 = vector.shape_cast %11 : vector<16x128xf32> to vector<1x16x128xf32>
    tpu.vector_store %arg3[%c0_7, %c0_8, %c0_9], %14 {strides = array<i32>} : memref<4x16x128xf32, #tpu.memory_space<vmem>>, vector<1x16x128xf32>,
    %c1 = arith.constant 1 : index
    %c0_10 = arith.constant 0 : index
    %c0_11 = arith.constant 0 : index
    %15 = vector.load %arg1[%c1, %c0_10, %c0_11] : memref<4x16x128xf32, #tpu.memory_space<vmem>>, vector<1x16x128xf32>
    %16 = vector.shape_cast %15 : vector<1x16x128xf32> to vector<16x128xf32>
    %cst_12 = arith.constant 5.000000e-01 : f32
    %17 = vector.broadcast %cst_12 : f32 to vector<16x128xf32>
    %18 = arith.mulf %17, %16 : vector<16x128xf32>
    %19 = math.tanh %18 : vector<16x128xf32>
    %cst_13 = arith.constant 1.000000e+00 : f32
    %20 = vector.broadcast %cst_13 : f32 to vector<16x128xf32>
    %21 = arith.addf %19, %20 : vector<16x128xf32>
    %cst_14 = arith.constant 5.000000e-01 : f32
    %22 = vector.broadcast %cst_14 : f32 to vector<16x128xf32>
    %23 = arith.mulf %22, %21 : vector<16x128xf32>
    %c1_15 = arith.constant 1 : index
    %c0_16 = arith.constant 0 : index
    %c0_17 = arith.constant 0 : index
    %24 = vector.load %arg2[%c1_15, %c0_16, %c0_17] : memref<4x16x128xf32, #tpu.memory_space<vmem>>, vector<1x16x128xf32>
    %25 = vector.shape_cast %24 : vector<1x16x128xf32> to vector<16x128xf32>
    %26 = arith.addf %23, %25 : vector<16x128xf32>
    %c1_18 = arith.constant 1 : index
    %c0_19 = arith.constant 0 : index
    %c0_20 = arith.constant 0 : index
    %27 = vector.load %arg3[%c1_18, %c0_19, %c0_20] : memref<4x16x128xf32, #tpu.memory_space<vmem>>, vector<1x16x128xf32>
    %28 = vector.shape_cast %27 : vector<1x16x128xf32> to vector<16x128xf32>
    %29 = vector.shape_cast %26 : vector<16x128xf32> to vector<1x16x128xf32>
    tpu.vector_store %arg3[%c1_18, %c0_19, %c0_20], %29 {strides = array<i32>} : memref<4x16x128xf32, #tpu.memory_space<vmem>>, vector<1x16x128xf32>,
    %c2 = arith.constant 2 : index
    %c0_21 = arith.constant 0 : index
    %c0_22 = arith.constant 0 : index
    %30 = vector.load %arg1[%c2, %c0_21, %c0_22] : memref<4x16x128xf32, #tpu.memory_space<vmem>>, vector<1x16x128xf32>
    %31 = vector.shape_cast %30 : vector<1x16x128xf32> to vector<16x128xf32>
    %32 = math.exp %31 : vector<16x128xf32>
    %c2_23 = arith.constant 2 : index
    %c0_24 = arith.constant 0 : index
    %c0_25 = arith.constant 0 : index
    %33 = vector.load %arg2[%c2_23, %c0_24, %c0_25] : memref<4x16x128xf32, #tpu.memory_space<vmem>>, vector<1x16x128xf32>
    %34 = vector.shape_cast %33 : vector<1x16x128xf32> to vector<16x128xf32>
    %35 = arith.mulf %32, %34 : vector<16x128xf32>
    %c2_26 = arith.constant 2 : index
    %c0_27 = arith.constant 0 : index
    %c0_28 = arith.constant 0 : index
    %36 = vector.load %arg3[%c2_26, %c0_27, %c0_28] : memref<4x16x128xf32, #tpu.memory_space<vmem>>, vector<1x16x128xf32>
    %37 = vector.shape_cast %36 : vector<1x16x128xf32> to vector<16x128xf32>
    %38 = vector.shape_cast %35 : vector<16x128xf32> to vector<1x16x128xf32>
    tpu.vector_store %arg3[%c2_26, %c0_27, %c0_28], %38 {strides = array<i32>} : memref<4x16x128xf32, #tpu.memory_space<vmem>>, vector<1x16x128xf32>,
    %c3 = arith.constant 3 : index
    %c0_29 = arith.constant 0 : index
    %c0_30 = arith.constant 0 : index
    %39 = vector.load %arg1[%c3, %c0_29, %c0_30] : memref<4x16x128xf32, #tpu.memory_space<vmem>>, vector<1x16x128xf32>
    %40 = vector.shape_cast %39 : vector<1x16x128xf32> to vector<16x128xf32>
    %41 = math.exp %40 : vector<16x128xf32>
    %c3_31 = arith.constant 3 : index
    %c0_32 = arith.constant 0 : index
    %c0_33 = arith.constant 0 : index
    %42 = vector.load %arg2[%c3_31, %c0_32, %c0_33] : memref<4x16x128xf32, #tpu.memory_space<vmem>>, vector<1x16x128xf32>
    %43 = vector.shape_cast %42 : vector<1x16x128xf32> to vector<16x128xf32>
    %44 = arith.mulf %41, %43 : vector<16x128xf32>
    %c3_34 = arith.constant 3 : index
    %c0_35 = arith.constant 0 : index
    %c0_36 = arith.constant 0 : index
    %45 = vector.load %arg3[%c3_34, %c0_35, %c0_36] : memref<4x16x128xf32, #tpu.memory_space<vmem>>, vector<1x16x128xf32>
    %46 = vector.shape_cast %45 : vector<1x16x128xf32> to vector<16x128xf32>
    %47 = vector.shape_cast %44 : vector<16x128xf32> to vector<1x16x128xf32>
    tpu.vector_store %arg3[%c3_34, %c0_35, %c0_36], %47 {strides = array<i32>} : memref<4x16x128xf32, #tpu.memory_space<vmem>>, vector<1x16x128xf32>,
    return
  }
  func.func @transform_0(%arg0: i32) -> (i32, i32, i32) {
    %c0_i32 = arith.constant 0 : i32
    %c0_i32_0 = arith.constant 0 : i32
    %c0_i32_1 = arith.constant 0 : i32
    return %c0_i32, %arg0, %c0_i32_0 : i32, i32, i32
  }
  func.func @transform_1(%arg0: i32) -> (i32, i32, i32) {
    %c0_i32 = arith.constant 0 : i32
    %c0_i32_0 = arith.constant 0 : i32
    %c0_i32_1 = arith.constant 0 : i32
    return %c0_i32, %arg0, %c0_i32_0 : i32, i32, i32
  }
  func.func @transform_2(%arg0: i32) -> (i32, i32, i32) {
    %c0_i32 = arith.constant 0 : i32
    %c0_i32_0 = arith.constant 0 : i32
    %c0_i32_1 = arith.constant 0 : i32
    return %c0_i32, %arg0, %c0_i32_0 : i32, i32, i32
  }
}

module attributes {stable_mosaic.version = 11 : i64} {
  func.func @loss_kernel(%arg0: i32, %arg1: memref<8x16x128xf32, #tpu.memory_space<vmem>>, %arg2: memref<9x16x128xf32, #tpu.memory_space<vmem>>, %arg3: memref<1x8x128xf32, #tpu.memory_space<vmem>>) attributes {dimension_semantics = [#tpu.dimension_semantics<parallel>], iteration_bounds = array<i64: 2>, scalar_prefetch = 0 : i64, scratch_operands = 0 : i64, tpu.core_type = #tpu.core_type<tc>, window_params = [{transform_indices = @transform_0, window_bounds = array<i64: 8, 16, 128>}, {transform_indices = @transform_1, window_bounds = array<i64: 9, 16, 128>}, {transform_indices = @transform_2, window_bounds = array<i64: 1, 8, 128>}]} {
    %c0 = arith.constant 0 : index
    %c0_0 = arith.constant 0 : index
    %c0_1 = arith.constant 0 : index
    %0 = vector.load %arg2[%c0, %c0_0, %c0_1] : memref<9x16x128xf32, #tpu.memory_space<vmem>>, vector<1x16x128xf32>
    %1 = vector.shape_cast %0 : vector<1x16x128xf32> to vector<16x128xf32>
    %c0_2 = arith.constant 0 : index
    %c0_3 = arith.constant 0 : index
    %c0_4 = arith.constant 0 : index
    %2 = vector.load %arg1[%c0_2, %c0_3, %c0_4] : memref<8x16x128xf32, #tpu.memory_space<vmem>>, vector<1x16x128xf32>
    %3 = vector.shape_cast %2 : vector<1x16x128xf32> to vector<16x128xf32>
    %cst = arith.constant 5.000000e-01 : f32
    %4 = vector.broadcast %cst : f32 to vector<16x128xf32>
    %5 = arith.mulf %4, %3 : vector<16x128xf32>
    %6 = math.tanh %5 : vector<16x128xf32>
    %cst_5 = arith.constant 1.000000e+00 : f32
    %7 = vector.broadcast %cst_5 : f32 to vector<16x128xf32>
    %8 = arith.addf %6, %7 : vector<16x128xf32>
    %cst_6 = arith.constant 5.000000e-01 : f32
    %9 = vector.broadcast %cst_6 : f32 to vector<16x128xf32>
    %10 = arith.mulf %9, %8 : vector<16x128xf32>
    %c1 = arith.constant 1 : index
    %c0_7 = arith.constant 0 : index
    %c0_8 = arith.constant 0 : index
    %11 = vector.load %arg1[%c1, %c0_7, %c0_8] : memref<8x16x128xf32, #tpu.memory_space<vmem>>, vector<1x16x128xf32>
    %12 = vector.shape_cast %11 : vector<1x16x128xf32> to vector<16x128xf32>
    %cst_9 = arith.constant 5.000000e-01 : f32
    %13 = vector.broadcast %cst_9 : f32 to vector<16x128xf32>
    %14 = arith.mulf %13, %12 : vector<16x128xf32>
    %15 = math.tanh %14 : vector<16x128xf32>
    %cst_10 = arith.constant 1.000000e+00 : f32
    %16 = vector.broadcast %cst_10 : f32 to vector<16x128xf32>
    %17 = arith.addf %15, %16 : vector<16x128xf32>
    %cst_11 = arith.constant 5.000000e-01 : f32
    %18 = vector.broadcast %cst_11 : f32 to vector<16x128xf32>
    %19 = arith.mulf %18, %17 : vector<16x128xf32>
    %c2 = arith.constant 2 : index
    %c0_12 = arith.constant 0 : index
    %c0_13 = arith.constant 0 : index
    %20 = vector.load %arg1[%c2, %c0_12, %c0_13] : memref<8x16x128xf32, #tpu.memory_space<vmem>>, vector<1x16x128xf32>
    %21 = vector.shape_cast %20 : vector<1x16x128xf32> to vector<16x128xf32>
    %c3 = arith.constant 3 : index
    %c0_14 = arith.constant 0 : index
    %c0_15 = arith.constant 0 : index
    %22 = vector.load %arg1[%c3, %c0_14, %c0_15] : memref<8x16x128xf32, #tpu.memory_space<vmem>>, vector<1x16x128xf32>
    %23 = vector.shape_cast %22 : vector<1x16x128xf32> to vector<16x128xf32>
    %c4 = arith.constant 4 : index
    %c0_16 = arith.constant 0 : index
    %c0_17 = arith.constant 0 : index
    %24 = vector.load %arg1[%c4, %c0_16, %c0_17] : memref<8x16x128xf32, #tpu.memory_space<vmem>>, vector<1x16x128xf32>
    %25 = vector.shape_cast %24 : vector<1x16x128xf32> to vector<16x128xf32>
    %cst_18 = arith.constant 5.000000e-01 : f32
    %26 = vector.broadcast %cst_18 : f32 to vector<16x128xf32>
    %27 = arith.mulf %26, %25 : vector<16x128xf32>
    %28 = math.tanh %27 : vector<16x128xf32>
    %cst_19 = arith.constant 1.000000e+00 : f32
    %29 = vector.broadcast %cst_19 : f32 to vector<16x128xf32>
    %30 = arith.addf %28, %29 : vector<16x128xf32>
    %cst_20 = arith.constant 5.000000e-01 : f32
    %31 = vector.broadcast %cst_20 : f32 to vector<16x128xf32>
    %32 = arith.mulf %31, %30 : vector<16x128xf32>
    %c2_21 = arith.constant 2 : index
    %c0_22 = arith.constant 0 : index
    %c0_23 = arith.constant 0 : index
    %33 = vector.load %arg2[%c2_21, %c0_22, %c0_23] : memref<9x16x128xf32, #tpu.memory_space<vmem>>, vector<1x16x128xf32>
    %34 = vector.shape_cast %33 : vector<1x16x128xf32> to vector<16x128xf32>
    %35 = arith.subf %10, %34 : vector<16x128xf32>
    %36 = arith.mulf %35, %1 : vector<16x128xf32>
    %37 = arith.mulf %36, %36 : vector<16x128xf32>
    %38 = vector.shape_cast %37 : vector<16x128xf32> to vector<1x16x128xf32>
    %cst_24 = arith.constant dense<0.000000e+00> : vector<1xf32>
    %39 = vector.multi_reduction <add>, %38, %cst_24 [1, 2] : vector<1x16x128xf32> to vector<1xf32>
    %40 = vector.shape_cast %39 : vector<1xf32> to vector<1x1x1xf32>
    %41 = vector.extract %40[0, 0, 0] : f32 from vector<1x1x1xf32>
    %c3_25 = arith.constant 3 : index
    %c0_26 = arith.constant 0 : index
    %c0_27 = arith.constant 0 : index
    %42 = vector.load %arg2[%c3_25, %c0_26, %c0_27] : memref<9x16x128xf32, #tpu.memory_space<vmem>>, vector<1x16x128xf32>
    %43 = vector.shape_cast %42 : vector<1x16x128xf32> to vector<16x128xf32>
    %44 = arith.subf %19, %43 : vector<16x128xf32>
    %45 = arith.mulf %44, %1 : vector<16x128xf32>
    %46 = arith.mulf %45, %45 : vector<16x128xf32>
    %47 = vector.shape_cast %46 : vector<16x128xf32> to vector<1x16x128xf32>
    %cst_28 = arith.constant dense<0.000000e+00> : vector<1xf32>
    %48 = vector.multi_reduction <add>, %47, %cst_28 [1, 2] : vector<1x16x128xf32> to vector<1xf32>
    %49 = vector.shape_cast %48 : vector<1xf32> to vector<1x1x1xf32>
    %50 = vector.extract %49[0, 0, 0] : f32 from vector<1x1x1xf32>
    %c4_29 = arith.constant 4 : index
    %c0_30 = arith.constant 0 : index
    %c0_31 = arith.constant 0 : index
    %51 = vector.load %arg2[%c4_29, %c0_30, %c0_31] : memref<9x16x128xf32, #tpu.memory_space<vmem>>, vector<1x16x128xf32>
    %52 = vector.shape_cast %51 : vector<1x16x128xf32> to vector<16x128xf32>
    %53 = arith.subf %21, %52 : vector<16x128xf32>
    %54 = arith.mulf %53, %1 : vector<16x128xf32>
    %55 = arith.mulf %54, %54 : vector<16x128xf32>
    %56 = vector.shape_cast %55 : vector<16x128xf32> to vector<1x16x128xf32>
    %cst_32 = arith.constant dense<0.000000e+00> : vector<1xf32>
    %57 = vector.multi_reduction <add>, %56, %cst_32 [1, 2] : vector<1x16x128xf32> to vector<1xf32>
    %58 = vector.shape_cast %57 : vector<1xf32> to vector<1x1x1xf32>
    %59 = vector.extract %58[0, 0, 0] : f32 from vector<1x1x1xf32>
    %c5 = arith.constant 5 : index
    %c0_33 = arith.constant 0 : index
    %c0_34 = arith.constant 0 : index
    %60 = vector.load %arg2[%c5, %c0_33, %c0_34] : memref<9x16x128xf32, #tpu.memory_space<vmem>>, vector<1x16x128xf32>
    %61 = vector.shape_cast %60 : vector<1x16x128xf32> to vector<16x128xf32>
    %62 = arith.subf %23, %61 : vector<16x128xf32>
    %63 = arith.mulf %62, %1 : vector<16x128xf32>
    %64 = arith.mulf %63, %63 : vector<16x128xf32>
    %65 = vector.shape_cast %64 : vector<16x128xf32> to vector<1x16x128xf32>
    %cst_35 = arith.constant dense<0.000000e+00> : vector<1xf32>
    %66 = vector.multi_reduction <add>, %65, %cst_35 [1, 2] : vector<1x16x128xf32> to vector<1xf32>
    %67 = vector.shape_cast %66 : vector<1xf32> to vector<1x1x1xf32>
    %68 = vector.extract %67[0, 0, 0] : f32 from vector<1x1x1xf32>
    %c6 = arith.constant 6 : index
    %c0_36 = arith.constant 0 : index
    %c0_37 = arith.constant 0 : index
    %69 = vector.load %arg2[%c6, %c0_36, %c0_37] : memref<9x16x128xf32, #tpu.memory_space<vmem>>, vector<1x16x128xf32>
    %70 = vector.shape_cast %69 : vector<1x16x128xf32> to vector<16x128xf32>
    %71 = arith.subf %32, %70 : vector<16x128xf32>
    %c1_38 = arith.constant 1 : index
    %c0_39 = arith.constant 0 : index
    %c0_40 = arith.constant 0 : index
    %72 = vector.load %arg2[%c1_38, %c0_39, %c0_40] : memref<9x16x128xf32, #tpu.memory_space<vmem>>, vector<1x16x128xf32>
    %73 = vector.shape_cast %72 : vector<1x16x128xf32> to vector<16x128xf32>
    %74 = arith.mulf %71, %73 : vector<16x128xf32>
    %75 = arith.mulf %74, %74 : vector<16x128xf32>
    %76 = vector.shape_cast %75 : vector<16x128xf32> to vector<1x16x128xf32>
    %cst_41 = arith.constant dense<0.000000e+00> : vector<1xf32>
    %77 = vector.multi_reduction <add>, %76, %cst_41 [1, 2] : vector<1x16x128xf32> to vector<1xf32>
    %78 = vector.shape_cast %77 : vector<1xf32> to vector<1x1x1xf32>
    %79 = vector.extract %78[0, 0, 0] : f32 from vector<1x1x1xf32>
    %c5_42 = arith.constant 5 : index
    %c0_43 = arith.constant 0 : index
    %c0_44 = arith.constant 0 : index
    %80 = vector.load %arg1[%c5_42, %c0_43, %c0_44] : memref<8x16x128xf32, #tpu.memory_space<vmem>>, vector<1x16x128xf32>
    %81 = vector.shape_cast %80 : vector<1x16x128xf32> to vector<16x128xf32>
    %c6_45 = arith.constant 6 : index
    %c0_46 = arith.constant 0 : index
    %c0_47 = arith.constant 0 : index
    %82 = vector.load %arg1[%c6_45, %c0_46, %c0_47] : memref<8x16x128xf32, #tpu.memory_space<vmem>>, vector<1x16x128xf32>
    %83 = vector.shape_cast %82 : vector<1x16x128xf32> to vector<16x128xf32>
    %84 = arith.maximumf %81, %83 : vector<16x128xf32>
    %c7 = arith.constant 7 : index
    %c0_48 = arith.constant 0 : index
    %c0_49 = arith.constant 0 : index
    %85 = vector.load %arg1[%c7, %c0_48, %c0_49] : memref<8x16x128xf32, #tpu.memory_space<vmem>>, vector<1x16x128xf32>
    %86 = vector.shape_cast %85 : vector<1x16x128xf32> to vector<16x128xf32>
    %87 = arith.maximumf %84, %86 : vector<16x128xf32>
    %c7_50 = arith.constant 7 : index
    %c0_51 = arith.constant 0 : index
    %c0_52 = arith.constant 0 : index
    %88 = vector.load %arg2[%c7_50, %c0_51, %c0_52] : memref<9x16x128xf32, #tpu.memory_space<vmem>>, vector<1x16x128xf32>
    %89 = vector.shape_cast %88 : vector<1x16x128xf32> to vector<16x128xf32>
    %cst_53 = arith.constant 0.000000e+00 : f32
    %90 = vector.broadcast %cst_53 : f32 to vector<16x128xf32>
    %cst_54 = arith.constant 0.000000e+00 : f32
    %91 = vector.broadcast %cst_54 : f32 to vector<16x128xf32>
    %c5_55 = arith.constant 5 : index
    %c0_56 = arith.constant 0 : index
    %c0_57 = arith.constant 0 : index
    %92 = vector.load %arg1[%c5_55, %c0_56, %c0_57] : memref<8x16x128xf32, #tpu.memory_space<vmem>>, vector<1x16x128xf32>
    %93 = vector.shape_cast %92 : vector<1x16x128xf32> to vector<16x128xf32>
    %94 = arith.subf %93, %87 : vector<16x128xf32>
    %95 = math.exp %94 : vector<16x128xf32>
    %96 = arith.addf %90, %95 : vector<16x128xf32>
    %cst_58 = arith.constant 0.000000e+00 : f32
    %97 = vector.broadcast %cst_58 : f32 to vector<16x128xf32>
    %98 = arith.cmpf oeq, %89, %97 : vector<16x128xf32>
    %cst_59 = arith.constant 0.000000e+00 : f32
    %99 = vector.broadcast %cst_59 : f32 to vector<16x128xf32>
    %100 = arith.select %98, %93, %99 : vector<16x128xi1>, vector<16x128xf32>
    %101 = arith.addf %91, %100 : vector<16x128xf32>
    %c6_60 = arith.constant 6 : index
    %c0_61 = arith.constant 0 : index
    %c0_62 = arith.constant 0 : index
    %102 = vector.load %arg1[%c6_60, %c0_61, %c0_62] : memref<8x16x128xf32, #tpu.memory_space<vmem>>, vector<1x16x128xf32>
    %103 = vector.shape_cast %102 : vector<1x16x128xf32> to vector<16x128xf32>
    %104 = arith.subf %103, %87 : vector<16x128xf32>
    %105 = math.exp %104 : vector<16x128xf32>
    %106 = arith.addf %96, %105 : vector<16x128xf32>
    %cst_63 = arith.constant 1.000000e+00 : f32
    %107 = vector.broadcast %cst_63 : f32 to vector<16x128xf32>
    %108 = arith.cmpf oeq, %89, %107 : vector<16x128xf32>
    %cst_64 = arith.constant 0.000000e+00 : f32
    %109 = vector.broadcast %cst_64 : f32 to vector<16x128xf32>
    %110 = arith.select %108, %103, %109 : vector<16x128xi1>, vector<16x128xf32>
    %111 = arith.addf %101, %110 : vector<16x128xf32>
    %c7_65 = arith.constant 7 : index
    %c0_66 = arith.constant 0 : index
    %c0_67 = arith.constant 0 : index
    %112 = vector.load %arg1[%c7_65, %c0_66, %c0_67] : memref<8x16x128xf32, #tpu.memory_space<vmem>>, vector<1x16x128xf32>
    %113 = vector.shape_cast %112 : vector<1x16x128xf32> to vector<16x128xf32>
    %114 = arith.subf %113, %87 : vector<16x128xf32>
    %115 = math.exp %114 : vector<16x128xf32>
    %116 = arith.addf %106, %115 : vector<16x128xf32>
    %cst_68 = arith.constant 2.000000e+00 : f32
    %117 = vector.broadcast %cst_68 : f32 to vector<16x128xf32>
    %118 = arith.cmpf oeq, %89, %117 : vector<16x128xf32>
    %cst_69 = arith.constant 0.000000e+00 : f32
    %119 = vector.broadcast %cst_69 : f32 to vector<16x128xf32>
    %120 = arith.select %118, %113, %119 : vector<16x128xi1>, vector<16x128xf32>
    %121 = arith.addf %111, %120 : vector<16x128xf32>
    %c8 = arith.constant 8 : index
    %c0_70 = arith.constant 0 : index
    %c0_71 = arith.constant 0 : index
    %122 = vector.load %arg2[%c8, %c0_70, %c0_71] : memref<9x16x128xf32, #tpu.memory_space<vmem>>, vector<1x16x128xf32>
    %123 = vector.shape_cast %122 : vector<1x16x128xf32> to vector<16x128xf32>
    %124 = math.log %116 : vector<16x128xf32>
    %125 = arith.addf %87, %124 : vector<16x128xf32>
    %126 = arith.subf %125, %121 : vector<16x128xf32>
    %127 = arith.mulf %123, %126 : vector<16x128xf32>
    %128 = vector.shape_cast %127 : vector<16x128xf32> to vector<1x16x128xf32>
    %cst_72 = arith.constant dense<0.000000e+00> : vector<1xf32>
    %129 = vector.multi_reduction <add>, %128, %cst_72 [1, 2] : vector<1x16x128xf32> to vector<1xf32>
    %130 = vector.shape_cast %129 : vector<1xf32> to vector<1x1x1xf32>
    %131 = vector.extract %130[0, 0, 0] : f32 from vector<1x1x1xf32>
    %132 = arith.addf %41, %50 : f32
    %133 = arith.addf %132, %59 : f32
    %134 = arith.addf %133, %68 : f32
    %cst_73 = arith.constant 5.000000e-01 : f32
    %135 = arith.mulf %cst_73, %134 : f32
    %cst_74 = arith.constant 5.000000e-01 : f32
    %136 = arith.mulf %cst_74, %79 : f32
    %137 = arith.addf %135, %136 : f32
    %cst_75 = arith.constant 1.000000e+00 : f32
    %138 = arith.mulf %cst_75, %131 : f32
    %139 = arith.addf %137, %138 : f32
    %140 = vector.broadcast %139 : f32 to vector<1x8x128xf32>
    %c0_76 = arith.constant 0 : index
    %c0_77 = arith.constant 0 : index
    %c0_78 = arith.constant 0 : index
    %141 = vector.load %arg3[%c0_76, %c0_77, %c0_78] : memref<1x8x128xf32, #tpu.memory_space<vmem>>, vector<1x8x128xf32>
    tpu.vector_store %arg3[%c0_76, %c0_77, %c0_78], %140 {strides = array<i32>} : memref<1x8x128xf32, #tpu.memory_space<vmem>>, vector<1x8x128xf32>,
    return
  }
  func.func @transform_0(%arg0: i32) -> (i32, i32, i32) {
    %c0_i32 = arith.constant 0 : i32
    %c0_i32_0 = arith.constant 0 : i32
    %c0_i32_1 = arith.constant 0 : i32
    return %c0_i32, %arg0, %c0_i32_0 : i32, i32, i32
  }
  func.func @transform_1(%arg0: i32) -> (i32, i32, i32) {
    %c0_i32 = arith.constant 0 : i32
    %c0_i32_0 = arith.constant 0 : i32
    %c0_i32_1 = arith.constant 0 : i32
    return %c0_i32, %arg0, %c0_i32_0 : i32, i32, i32
  }
  func.func @transform_2(%arg0: i32) -> (i32, i32, i32) {
    %c0_i32 = arith.constant 0 : i32
    %c0_i32_0 = arith.constant 0 : i32
    %c0_i32_1 = arith.constant 0 : i32
    return %arg0, %c0_i32, %c0_i32_0 : i32, i32, i32
  }
}

</mosaic_0001>

<bundles_post_ra>
// kernel: device_tail.2
= control target key start
LH: loop header
LB: loop body
LE: loop exit
PB: predicated region body
PF: predicated region fallthrough
CT: control target
= control target key end

     0   :  { %s618_s9 = smov 0   ;;  %s620_s10 = smov 0   ;;  %s714_s0 = inlined_call_operand.vmem [shape: f32[8,32,128], index: 0, kind: input, shape index: {}]   ;;  %s715_s1 = inlined_call_operand.vmem [shape: f32[4,32,128], index: 1, kind: input, shape index: {}]   ;;  %s716_s2 = inlined_call_operand.vmem [shape: f32[4,32,128], index: 2, kind: output, shape index: {}]  }
   0x1   :  { %s622_s11 = smov 0  }
   0x2 LB: > { %s499_s12 = sadd.s32 4294967295, %s601_s11   ;;  %s635_s13 = sadd.s32 1, %s601_s11   ;;  %s601_s11 = sphi %s622_s11, %s721_s11   ;;  %s597_s10 = sphi %s620_s10, %s720_s10   ;;  %s593_s9 = sphi %s618_s9, %s719_s9  }
   0x3   : > { %s16_s14 = ssub.s32 %s601_s11, %s635_s13  ;;  %s19_s15 = sadd.s32 1, %s597_s10 }
   0x4   : > { %p17_p0 = scmp.eq.s32.totalorder %s16_s14, 0  ;;  %p26_p1 = scmp.ne.s32.totalorder %s597_s10, %s593_s9 }
   0x5   : > { %p27_p2 = scmp.eq.s32.totalorder %s601_s11, 0  ;;  %p82_p3 = scmp.eq.s32.totalorder %s499_s12, 1 }
   0x6   : > { %s646_s16 = scalar_select %p17_p0, %s597_s10, %s19_s15  }
   0x7   : > { %p648_p4 = por %p27_p2, %p26_p1  ;;  %p652_p5 = por %p82_p3, %p26_p1 }
   0x8   : > { %p502_p6 = scmp.ge.s32.totalorder %s601_s11, 2 }
   0xa   : > { %104 = sbr.rel (%p502_p6) target bundleno = 39 (0x27), region = 16 }
   0xf   : > { %107 = sbr.rel (!%p648_p4) target bundleno = 27 (0x1b), region = 20  ;;  %s109_s19 = sand.u32 (%p648_p4), 1, %s597_s10  }
  0x10   : > { %s536_s20 = sshll.u32 (%p648_p4), %s601_s11, 4  ;;  %s503_s21 = sshll.u32 (%p648_p4), %s109_s19, 6 }
  0x11   : > { %s114_s24 = scalar_lea.vmem (%p648_p4), %s714_s0, %s536_s20  ;;  %s111_s25 = scalar_lea.vmem (%p648_p4), [#allocation2], %s503_s21 }
  0x12   : > { %v157_v0 = vld [vmem:[%s114_s24] sm:$0xff] (%p648_p4)  ;;  %v159_v1 = vld [vmem:[%s114_s24 + $0x8] sm:$0xff] (%p648_p4) }
  0x13   : > { %v161_v2 = vld [vmem:[%s114_s24 + $0x20] sm:$0xff] (%p648_p4)  ;;  %158 = vst [vmem:[%s111_s25] sm:$0xff] (%p648_p4), %v157_v0  ;;  %v163_v3 = vld [vmem:[%s114_s24 + $0x28] sm:$0xff] (%p648_p4) }
  0x14   : > { %160 = vst [vmem:[%s111_s25 + $0x8] sm:$0xff] %v159_v1  ;;  %v165_v4 = vld [vmem:[%s114_s24 + $0x40] sm:$0xff]  ;;  %v167_v5 = vld [vmem:[%s114_s24 + $0x48] sm:$0xff] }
  0x15   : > { %162 = vst [vmem:[%s111_s25 + $0x10] sm:$0xff] %v161_v2  ;;  %v169_v6 = vld [vmem:[%s114_s24 + $0x60] sm:$0xff]  ;;  %v171_v7 = vld [vmem:[%s114_s24 + $0x68] sm:$0xff] }
  0x16   : > { %164 = vst [vmem:[%s111_s25 + $0x18] sm:$0xff] %v163_v3 }
  0x17   : > { %166 = vst [vmem:[%s111_s25 + $0x20] sm:$0xff] %v165_v4 }
  0x18   : > { %168 = vst [vmem:[%s111_s25 + $0x28] sm:$0xff] %v167_v5 }
  0x19   : > { %170 = vst [vmem:[%s111_s25 + $0x30] sm:$0xff] %v169_v6 }
  0x1a   : > { %172 = vst [vmem:[%s111_s25 + $0x38] sm:$0xff] %v171_v7 }
  0x1b PF: > { %178 = sbr.rel (!%p648_p4) target bundleno = 39 (0x27), region = 58  ;;  %s180_s26 = sand.u32 (%p648_p4), 1, %s597_s10  }
  0x1c   : > { %s537_s27 = sshll.u32 (%p648_p4), %s601_s11, 4  ;;  %s506_s28 = sshll.u32 (%p648_p4), %s180_s26, 6 }
  0x1d   : > { %s185_s3 = scalar_lea.vmem (%p648_p4), %s715_s1, %s537_s27  ;;  %s182_s4 = scalar_lea.vmem (%p648_p4), [#allocation3], %s506_s28 }
  0x1e   : > { %v228_v8 = vld [vmem:[%s185_s3] sm:$0xff] (%p648_p4)  ;;  %v230_v9 = vld [vmem:[%s185_s3 + $0x8] sm:$0xff] (%p648_p4) }
  0x1f   : > { %v232_v10 = vld [vmem:[%s185_s3 + $0x20] sm:$0xff] (%p648_p4)  ;;  %229 = vst [vmem:[%s182_s4] sm:$0xff] (%p648_p4), %v228_v8  ;;  %v234_v11 = vld [vmem:[%s185_s3 + $0x28] sm:$0xff] (%p648_p4) }
  0x20   : > { %231 = vst [vmem:[%s182_s4 + $0x8] sm:$0xff] %v230_v9  ;;  %v236_v12 = vld [vmem:[%s185_s3 + $0x40] sm:$0xff]  ;;  %v238_v13 = vld [vmem:[%s185_s3 + $0x48] sm:$0xff] }
  0x21   : > { %233 = vst [vmem:[%s182_s4 + $0x10] sm:$0xff] %v232_v10  ;;  %v240_v14 = vld [vmem:[%s185_s3 + $0x60] sm:$0xff]  ;;  %v242_v15 = vld [vmem:[%s185_s3 + $0x68] sm:$0xff] }
  0x22   : > { %235 = vst [vmem:[%s182_s4 + $0x18] sm:$0xff] %v234_v11 }
  0x23   : > { %237 = vst [vmem:[%s182_s4 + $0x20] sm:$0xff] %v236_v12 }
  0x24   : > { %239 = vst [vmem:[%s182_s4 + $0x28] sm:$0xff] %v238_v13 }
  0x25   : > { %241 = vst [vmem:[%s182_s4 + $0x30] sm:$0xff] %v240_v14 }
  0x26   : > { %243 = vst [vmem:[%s182_s4 + $0x38] sm:$0xff] %v242_v15 }
  0x27 PF: > { %p509_p7 = scmp.ge.s32.totalorder %s601_s11, 1  ;;  %p248_p8 = scmp.lt.s32.totalorder %s601_s11, 3 }
  0x29   : > { %p249_p9 = pnand %p509_p7, %p248_p8 }
  0x2a   : > { %s255_s5 = sand.u32 (!%p249_p9), 1, %s593_s9  }
  0x2b   : > { %252 = sbr.rel (%p249_p9) target bundleno = 80 (0x50), region = 96  ;;  %s674_s6 = sshll.u32 (!%p249_p9), %s255_s5, 6 }
  0x2c   : > { %s257_s7 = scalar_lea.vmem (!%p249_p9), [#allocation2], %s674_s6  ;;  %s264_s8 = scalar_lea.vmem (!%p249_p9), [#allocation3], %s674_s6 }
  0x2d   : > { %s679_s9 = scalar_lea.vmem (!%p249_p9), [#allocation4], %s674_s6 }
  0x30   : > { %v289_v16 = vld [vmem:[%s257_s7] sm:$0xff]  ;;  %v290_v17 = vld [vmem:[%s257_s7 + $0x8] sm:$0xff]  ;;  %v513_v20 = vld [vmem:[%s257_s7 + $0x10] sm:$0xff]  ;;  %s538_s14 = sshll.u32 (%p652_p5), %s499_s12, 4 }
  0x31   : > { %v291_v18 = vmul.f32 0.5, %v289_v16  ;;  %v292_v19 = vmul.f32 0.5, %v290_v17  ;;  %v308_v21 = vmul.f32 0.5, %v513_v20  ;;  %v514_v22 = vld [vmem:[%s257_s7 + $0x18] sm:$0xff]  ;;  %v519_v23 = vld [vmem:[%s257_s7 + $0x20] sm:$0xff]  ;;  %v520_v26 = vld [vmem:[%s257_s7 + $0x28] sm:$0xff]  ;;  %s363_s19 = scalar_lea.vmem (%p652_p5), %s716_s2, %s538_s14 }
  0x32   : > { %v309_v24 = vmul.f32 0.5, %v514_v22  ;;  %v327_v25 = vmul.f32 1.442695, %v519_v23  ;;  %v329_v27 = vmul.f32 1.442695, %v520_v26  ;;  %v525_v28 = vld [vmem:[%s257_s7 + $0x30] sm:$0xff] }
  0x33   : > { %563 = vtanh.f32 %v291_v18  ;;  %v526_v29 = vld [vmem:[%s257_s7 + $0x38] sm:$0xff]  ;;  %v342_v30 = vmul.f32 1.442695, %v525_v28  ;;  %v299_v36 = vld [vmem:[%s264_s8] sm:$0xff]  ;;  %v300_v40 = vld [vmem:[%s264_s8 + $0x8] sm:$0xff] }
  0x34   : > { %565 = vtanh.f32 %v292_v19  ;;  %v344_v31 = vmul.f32 1.442695, %v526_v29  ;;  %v515_v44 = vld [vmem:[%s264_s8 + $0x10] sm:$0xff]  ;;  %v521_v46 = vld [vmem:[%s264_s8 + $0x20] sm:$0xff]  ;;  %v516_v50 = vld [vmem:[%s264_s8 + $0x18] sm:$0xff] }
  0x35   : > { %567 = vtanh.f32 %v308_v21  ;;  %v522_v51 = vld [vmem:[%s264_s8 + $0x28] sm:$0xff]  ;;  %v527_v55 = vld [vmem:[%s264_s8 + $0x30] sm:$0xff]  ;;  %v528_v59 = vld [vmem:[%s264_s8 + $0x38] sm:$0xff] }
  0x36   : > { %569 = vtanh.f32 %v309_v24 }
  0x37   : > { %571 = vpow2.f32 %v327_v25 }
  0x38   : > { %573 = vpow2.f32 %v329_v27 }
  0x39   : > { %v564_v32 = vpop.eup %563  ;;  %575 = vpow2.f32 %v342_v30 }
  0x3a   : > { %v566_v33 = vpop.eup %565  ;;  %v295_v34 = vadd.f32 1.0, %v564_v32  ;;  %577 = vpow2.f32 %v344_v31 }
  0x3b   : > { %v568_v35 = vpop.eup %567  ;;  %v296_v37 = vadd.f32 1.0, %v566_v33 }
  0x3c   : > { %v570_v38 = vpop.eup %569  ;;  %v297_v39 = vmul.f32 0.5, %v295_v34  ;;  %v312_v41 = vadd.f32 1.0, %v568_v35 }
  0x3d   : > { %v572_v42 = vpop.eup %571  ;;  %v298_v43 = vmul.f32 0.5, %v296_v37  ;;  %v313_v45 = vadd.f32 1.0, %v570_v38 }
  0x3e   : > { %v574_v47 = vpop.eup %573  ;;  %v301_v48 = vadd.f32 %v299_v36, %v297_v39  ;;  %v314_v49 = vmul.f32 0.5, %v312_v41  ;;  %v334_v58 = vmul.f32 %v572_v42, %v521_v46 }
  0x3f   : > { %v576_v52 = vpop.eup %575  ;;  %v302_v53 = vadd.f32 %v300_v40, %v298_v43  ;;  %v315_v54 = vmul.f32 0.5, %v313_v45  ;;  %v335_v61 = vmul.f32 %v574_v47, %v522_v51 }
  0x40   : > { %v578_v56 = vpop.eup %577  ;;  %303 = vst [vmem:[%s679_s9] sm:$0xff] %v301_v48  ;;  %v319_v57 = vadd.f32 %v515_v44, %v314_v49  ;;  %v349_v62 = vmul.f32 %v576_v52, %v527_v55 }
  0x41   : > { %304 = vst [vmem:[%s679_s9 + $0x8] sm:$0xff] %v302_v53  ;;  %v320_v60 = vadd.f32 %v516_v50, %v315_v54  ;;  %v350_v63 = vmul.f32 %v578_v56, %v528_v59 }
  0x42   : > { %517 = vst [vmem:[%s679_s9 + $0x10] sm:$0xff] %v319_v57 }
  0x43   : > { %518 = vst [vmem:[%s679_s9 + $0x18] sm:$0xff] %v320_v60  ;;  %360 = sbr.rel (!%p652_p5) target bundleno = 80 (0x50), region = 108 }
  0x44   : > { %523 = vst [vmem:[%s679_s9 + $0x20] sm:$0xff] %v334_v58 }
  0x45   : > { %524 = vst [vmem:[%s679_s9 + $0x28] sm:$0xff] %v335_v61 }
  0x46   : > { %529 = vst [vmem:[%s679_s9 + $0x30] sm:$0xff] %v349_v62 }
  0x47   : > { %530 = vst [vmem:[%s679_s9 + $0x38] sm:$0xff] %v350_v63  ;;  %v406_v0 = vld [vmem:[%s679_s9] sm:$0xff] (%p652_p5) }
  0x48   : > { %v408_v1 = vld [vmem:[%s679_s9 + $0x8] sm:$0xff]  ;;  %407 = vst [vmem:[%s363_s19] sm:$0xff] %v406_v0 }
  0x49   : > { %v410_v2 = vld [vmem:[%s679_s9 + $0x10] sm:$0xff]  ;;  %409 = vst [vmem:[%s363_s19 + $0x8] sm:$0xff] %v408_v1 }
  0x4a   : > { %v412_v3 = vld [vmem:[%s679_s9 + $0x18] sm:$0xff]  ;;  %411 = vst [vmem:[%s363_s19 + $0x20] sm:$0xff] %v410_v2 }
  0x4b   : > { %v414_v4 = vld [vmem:[%s679_s9 + $0x20] sm:$0xff]  ;;  %413 = vst [vmem:[%s363_s19 + $0x28] sm:$0xff] %v412_v3 }
  0x4c   : > { %v416_v5 = vld [vmem:[%s679_s9 + $0x28] sm:$0xff]  ;;  %415 = vst [vmem:[%s363_s19 + $0x40] sm:$0xff] %v414_v4 }
  0x4d   : > { %v418_v6 = vld [vmem:[%s679_s9 + $0x30] sm:$0xff]  ;;  %417 = vst [vmem:[%s363_s19 + $0x48] sm:$0xff] %v416_v5 }
  0x4e   : > { %v420_v7 = vld [vmem:[%s679_s9 + $0x38] sm:$0xff]  ;;  %419 = vst [vmem:[%s363_s19 + $0x60] sm:$0xff] %v418_v6 }
  0x4f   : > { %421 = vst [vmem:[%s363_s19 + $0x68] sm:$0xff] %v420_v7 }
  0x50 PF: > { %p9_p10 = scmp.ge.s32.totalorder %s635_s13, 4   ;;  %s719_s9 = smov %s597_s10 }
  0x51   : > { %s720_s10 = smov %s646_s16  ;;  %s721_s11 = smov %s635_s13 }
  0x52   :  { %11 = sbr.rel (!%p9_p10) target bundleno = 2 (0x2), region = 194 }

// kernel: device_tail.3
= control target key start
LH: loop header
LB: loop body
LE: loop exit
PB: predicated region body
PF: predicated region fallthrough
CT: control target
= control target key end

     0   :  { %s820_s9 = smov 0   ;;  %s822_s10 = smov 0   ;;  %s1037_s0 = inlined_call_operand.vmem [shape: f32[8,32,128], index: 0, kind: input, shape index: {}]   ;;  %s1038_s1 = inlined_call_operand.vmem [shape: f32[9,32,128], index: 1, kind: input, shape index: {}]   ;;  %s1039_s2 = inlined_call_operand.vmem [shape: f32[2,8,128], index: 2, kind: output, shape index: {}]  }
   0x1   :  { %s824_s11 = smov 0  }
   0x2 LB: > { %s669_s12 = sadd.s32 4294967295, %s803_s11   ;;  %s837_s13 = sadd.s32 1, %s803_s11   ;;  %s803_s11 = sphi %s824_s11, %s1043_s11   ;;  %s799_s10 = sphi %s822_s10, %s1042_s10   ;;  %s795_s9 = sphi %s820_s9, %s1041_s9  }
   0x3   : > { %s16_s14 = ssub.s32 %s803_s11, %s837_s13  ;;  %s19_s15 = sadd.s32 1, %s799_s10 }
   0x4   : > { %p17_p0 = scmp.eq.s32.totalorder %s16_s14, 0  ;;  %p26_p1 = scmp.ne.s32.totalorder %s799_s10, %s795_s9 }
   0x5   : > { %p27_p2 = scmp.eq.s32.totalorder %s803_s11, 0  ;;  %p672_p4 = scmp.ge.s32.totalorder %s803_s11, 2 }
   0x6   : > { %s846_s16 = scalar_select %p17_p0, %s799_s10, %s19_s15  }
   0x7   : > { %p848_p3 = por %p27_p2, %p26_p1  ;;  %104 = sbr.rel (%p672_p4) target bundleno = 54 (0x36), region = 16 }
   0xc   : > { %107 = sbr.rel (!%p848_p3) target bundleno = 32 (0x20), region = 20  ;;  %s109_s18 = sand.u32 (%p848_p3), 1, %s799_s10  }
   0xd   : > { %s713_s19 = sshll.u32 (%p848_p3), %s803_s11, 4  ;;  %s673_s20 = sshll.u32 (%p848_p3), %s109_s18, 7 }
   0xe   : > { %s860_s23 = scalar_lea.vmem (%p848_p3), %s1037_s0, %s713_s19  ;;  %s111_s24 = scalar_lea.vmem (%p848_p3), [#allocation2], %s673_s20 }
   0xf   : > { %v173_v0 = vld [vmem:[%s860_s23] sm:$0xff] (%p848_p3)  ;;  %v175_v1 = vld [vmem:[%s860_s23 + $0x8] sm:$0xff] (%p848_p3) }
  0x10   : > { %v177_v2 = vld [vmem:[%s860_s23 + $0x20] sm:$0xff] (%p848_p3)  ;;  %174 = vst [vmem:[%s111_s24] sm:$0xff] (%p848_p3), %v173_v0  ;;  %v179_v3 = vld [vmem:[%s860_s23 + $0x28] sm:$0xff] (%p848_p3) }
  0x11   : > { %176 = vst [vmem:[%s111_s24 + $0x8] sm:$0xff] %v175_v1  ;;  %v181_v4 = vld [vmem:[%s860_s23 + $0x40] sm:$0xff]  ;;  %v183_v5 = vld [vmem:[%s860_s23 + $0x48] sm:$0xff] }
  0x12   : > { %178 = vst [vmem:[%s111_s24 + $0x10] sm:$0xff] %v177_v2  ;;  %v185_v6 = vld [vmem:[%s860_s23 + $0x60] sm:$0xff]  ;;  %v187_v7 = vld [vmem:[%s860_s23 + $0x68] sm:$0xff] }
  0x13   : > { %180 = vst [vmem:[%s111_s24 + $0x18] sm:$0xff] %v179_v3  ;;  %v189_v8 = vld [vmem:[%s860_s23 + $0x80] sm:$0xff]  ;;  %v191_v9 = vld [vmem:[%s860_s23 + $0x88] sm:$0xff] }
  0x14   : > { %182 = vst [vmem:[%s111_s24 + $0x20] sm:$0xff] %v181_v4  ;;  %v193_v10 = vld [vmem:[%s860_s23 + $0xa0] sm:$0xff]  ;;  %v195_v11 = vld [vmem:[%s860_s23 + $0xa8] sm:$0xff] }
  0x15   : > { %184 = vst [vmem:[%s111_s24 + $0x28] sm:$0xff] %v183_v5  ;;  %v197_v12 = vld [vmem:[%s860_s23 + $0xc0] sm:$0xff]  ;;  %v199_v13 = vld [vmem:[%s860_s23 + $0xc8] sm:$0xff] }
  0x16   : > { %186 = vst [vmem:[%s111_s24 + $0x30] sm:$0xff] %v185_v6  ;;  %v201_v14 = vld [vmem:[%s860_s23 + $0xe0] sm:$0xff]  ;;  %v203_v15 = vld [vmem:[%s860_s23 + $0xe8] sm:$0xff] }
  0x17   : > { %188 = vst [vmem:[%s111_s24 + $0x38] sm:$0xff] %v187_v7 }
  0x18   : > { %190 = vst [vmem:[%s111_s24 + $0x40] sm:$0xff] %v189_v8 }
  0x19   : > { %192 = vst [vmem:[%s111_s24 + $0x48] sm:$0xff] %v191_v9 }
  0x1a   : > { %194 = vst [vmem:[%s111_s24 + $0x50] sm:$0xff] %v193_v10 }
  0x1b   : > { %196 = vst [vmem:[%s111_s24 + $0x58] sm:$0xff] %v195_v11 }
  0x1c   : > { %198 = vst [vmem:[%s111_s24 + $0x60] sm:$0xff] %v197_v12 }
  0x1d   : > { %200 = vst [vmem:[%s111_s24 + $0x68] sm:$0xff] %v199_v13 }
  0x1e   : > { %202 = vst [vmem:[%s111_s24 + $0x70] sm:$0xff] %v201_v14 }
  0x1f   : > { %204 = vst [vmem:[%s111_s24 + $0x78] sm:$0xff] %v203_v15 }
  0x20 PF: > { %210 = sbr.rel (!%p848_p3) target bundleno = 54 (0x36), region = 58  ;;  %s212_s25 = sand.u32 (%p848_p3), 1, %s799_s10  }
  0x21   : > { %s714_s26 = sshll.u32 (%p848_p3), %s803_s11, 4  ;;  %s715_s27 = smul.u32 (%p848_p3), 144, %s212_s25 }
  0x22   : > { %s885_s30 = scalar_lea.vmem (%p848_p3), %s1038_s1, %s714_s26 }
  0x23   : > { %v280_v16 = vld [vmem:[%s885_s30] sm:$0xff] (%p848_p3)  ;;  %v282_v17 = vld [vmem:[%s885_s30 + $0x8] sm:$0xff] (%p848_p3)  ;;  %s890_s3 = scalar_lea.vmem (%p848_p3), [#allocation3], %s715_s27 }
  0x24   : > { %v284_v18 = vld [vmem:[%s885_s30 + $0x20] sm:$0xff] (%p848_p3)  ;;  %281 = vst [vmem:[%s890_s3] sm:$0xff] (%p848_p3), %v280_v16  ;;  %v286_v19 = vld [vmem:[%s885_s30 + $0x28] sm:$0xff] (%p848_p3) }
  0x25   : > { %283 = vst [vmem:[%s890_s3 + $0x8] sm:$0xff] %v282_v17  ;;  %v288_v20 = vld [vmem:[%s885_s30 + $0x40] sm:$0xff]  ;;  %v290_v21 = vld [vmem:[%s885_s30 + $0x48] sm:$0xff] }
  0x26   : > { %285 = vst [vmem:[%s890_s3 + $0x10] sm:$0xff] %v284_v18  ;;  %v292_v22 = vld [vmem:[%s885_s30 + $0x60] sm:$0xff]  ;;  %v294_v23 = vld [vmem:[%s885_s30 + $0x68] sm:$0xff] }
  0x27   : > { %287 = vst [vmem:[%s890_s3 + $0x18] sm:$0xff] %v286_v19  ;;  %v296_v24 = vld [vmem:[%s885_s30 + $0x80] sm:$0xff]  ;;  %v298_v25 = vld [vmem:[%s885_s30 + $0x88] sm:$0xff] }
  0x28   : > { %289 = vst [vmem:[%s890_s3 + $0x20] sm:$0xff] %v288_v20  ;;  %v300_v26 = vld [vmem:[%s885_s30 + $0xa0] sm:$0xff]  ;;  %v302_v27 = vld [vmem:[%s885_s30 + $0xa8] sm:$0xff] }
  0x29   : > { %291 = vst [vmem:[%s890_s3 + $0x28] sm:$0xff] %v290_v21  ;;  %v304_v28 = vld [vmem:[%s885_s30 + $0xc0] sm:$0xff]  ;;  %v306_v29 = vld [vmem:[%s885_s30 + $0xc8] sm:$0xff] }
  0x2a   : > { %293 = vst [vmem:[%s890_s3 + $0x30] sm:$0xff] %v292_v22  ;;  %v308_v30 = vld [vmem:[%s885_s30 + $0xe0] sm:$0xff]  ;;  %v310_v31 = vld [vmem:[%s885_s30 + $0xe8] sm:$0xff] }
  0x2b   : > { %295 = vst [vmem:[%s890_s3 + $0x38] sm:$0xff] %v294_v23  ;;  %v312_v32 = vld [vmem:[%s885_s30 + $0x100] sm:$0xff]  ;;  %v314_v33 = vld [vmem:[%s885_s30 + $0x108] sm:$0xff] }
  0x2c   : > { %297 = vst [vmem:[%s890_s3 + $0x40] sm:$0xff] %v296_v24 }
  0x2d   : > { %299 = vst [vmem:[%s890_s3 + $0x48] sm:$0xff] %v298_v25 }
  0x2e   : > { %301 = vst [vmem:[%s890_s3 + $0x50] sm:$0xff] %v300_v26 }
  0x2f   : > { %303 = vst [vmem:[%s890_s3 + $0x58] sm:$0xff] %v302_v27 }
  0x30   : > { %305 = vst [vmem:[%s890_s3 + $0x60] sm:$0xff] %v304_v28 }
  0x31   : > { %307 = vst [vmem:[%s890_s3 + $0x68] sm:$0xff] %v306_v29 }
  0x32   : > { %309 = vst [vmem:[%s890_s3 + $0x70] sm:$0xff] %v308_v30 }
  0x33   : > { %311 = vst [vmem:[%s890_s3 + $0x78] sm:$0xff] %v310_v31 }
  0x34   : > { %313 = vst [vmem:[%s890_s3 + $0x80] sm:$0xff] %v312_v32 }
  0x35   : > { %315 = vst [vmem:[%s890_s3 + $0x88] sm:$0xff] %v314_v33 }
  0x36 PF: > { %p678_p5 = scmp.ge.s32.totalorder %s803_s11, 1  ;;  %p320_p6 = scmp.lt.s32.totalorder %s803_s11, 3 }
  0x38   : > { %p321_p7 = pnand %p678_p5, %p320_p6 }
  0x39   : > { %s327_s4 = sand.u32 (!%p321_p7), 1, %s795_s9   ;;  %p360_p8 = scmp.lt.s32.totalorder (!%p321_p7), %s669_s12, 1 }
  0x3a   : > { %324 = sbr.rel (%p321_p7) target bundleno = 295 (0x127), region = 96  ;;  %s679_s5 = sshll.u32 (!%p321_p7), %s327_s4, 7 }
  0x3b   : > { %s716_s6 = smul.u32 (!%p321_p7), 144, %s327_s4  ;;  %s928_s7 = scalar_lea.vmem (!%p321_p7), [#allocation2], %s679_s5 }
  0x3d   : > { %s933_s8 = scalar_lea.vmem (!%p321_p7), [#allocation3], %s716_s6 }
  0x3f   : > { %v683_v34 = vld [vmem:[%s928_s7 + $0x20] sm:$0xff]  ;;  %v684_v35 = vld [vmem:[%s928_s7 + $0x28] sm:$0xff]  ;;  %v685_v52 = vld [vmem:[%s928_s7 + $0x30] sm:$0xff]  ;;  %s1045_s12 = smov (!%p360_p8, %s669_s12), 1 }
  0x40   : > { %v366_v36 = vld [vmem:[%s928_s7] sm:$0xff]  ;;  %v940_v40 = vld [vmem:[%s933_s8 + $0x8] sm:$0xff]  ;;  %v696_v56 = vld [vmem:[%s933_s8 + $0x58] sm:$0xff]  ;;  %s680_s25 = sshll.u32 %s1045_s12, 3 }
  0x41   : > { %v936_v37 = vld [vmem:[%s933_s8] sm:$0xff]  ;;  %v368_v39 = vmul.f32 0.5, %v366_v36  ;;  %v694_v41 = vld [vmem:[%s933_s8 + $0x48] sm:$0xff]  ;;  %v695_v55 = vld [vmem:[%s933_s8 + $0x50] sm:$0xff]  ;;  %s363_s29 = scalar_lea.vmem %s1039_s2, %s680_s25 }
  0x42   : > { %v693_v38 = vld [vmem:[%s933_s8 + $0x40] sm:$0xff]  ;;  %v367_v43 = vld [vmem:[%s928_s7 + $0x8] sm:$0xff]  ;;  %v446_v44 = vsub.f32 %v684_v35, %v694_v41  ;;  %v686_v53 = vld [vmem:[%s928_s7 + $0x38] sm:$0xff]  ;;  %v464_v59 = vsub.f32 %v685_v52, %v695_v55 }
  0x43   : > { %v445_v42 = vsub.f32 %v683_v34, %v693_v38  ;;  %v369_v45 = vmul.f32 0.5, %v367_v43  ;;  %753 = vtanh.f32 %v368_v39  ;;  %v687_v46 = vld [vmem:[%s928_s7 + $0x40] sm:$0xff]  ;;  %v688_v47 = vld [vmem:[%s928_s7 + $0x48] sm:$0xff]  ;;  %v681_v57 = vld [vmem:[%s928_s7 + $0x10] sm:$0xff]  ;;  %v465_v60 = vsub.f32 %v686_v53, %v696_v56 }
  0x44   : > { %v396_v49 = vmul.f32 0.5, %v687_v46  ;;  %v397_v50 = vmul.f32 0.5, %v688_v47  ;;  %v448_v51 = vmul.f32 %v446_v44, %v940_v40  ;;  %v682_v61 = vld [vmem:[%s928_s7 + $0x18] sm:$0xff]  ;;  %v379_v62 = vmul.f32 0.5, %v681_v57  ;;  %v955_v0 = vld [vmem:[%s928_s7 + $0x50] sm:$0xff]  ;;  %v961_v2 = vld [vmem:[%s928_s7 + $0x60] sm:$0xff] }
  0x45   : > { %v447_v48 = vmul.f32 %v445_v42, %v936_v37  ;;  %755 = vtanh.f32 %v369_v45  ;;  %v380_v63 = vmul.f32 0.5, %v682_v61  ;;  %v958_v1 = vld [vmem:[%s928_s7 + $0x58] sm:$0xff]  ;;  %v466_v5 = vmul.f32 %v464_v59, %v936_v37  ;;  %v966_v7 = vld [vmem:[%s928_s7 + $0x68] sm:$0xff]  ;;  %v971_v9 = vld [vmem:[%s928_s7 + $0x70] sm:$0xff] }
  0x46   : > { %757 = vtanh.f32 %v396_v49  ;;  %v450_v58 = vmul.f32 %v448_v51, %v448_v51  ;;  %v467_v6 = vmul.f32 %v465_v60, %v940_v40  ;;  %v508_v8 = vmax.f32 %v955_v0, %v961_v2  ;;  %v974_v10 = vld [vmem:[%s928_s7 + $0x78] sm:$0xff]  ;;  %v689_v14 = vld [vmem:[%s933_s8 + $0x20] sm:$0xff]  ;;  %v699_v39 = vld [vmem:[%s933_s8 + $0x10] sm:$0xff] }
  0x47   : > { %v449_v54 = vmul.f32 %v447_v48, %v447_v48  ;;  %759 = vtanh.f32 %v397_v50  ;;  %v509_v12 = vmax.f32 %v958_v1, %v966_v7  ;;  %v468_v15 = vmul.f32 %v466_v5, %v466_v5  ;;  %v690_v23 = vld [vmem:[%s933_s8 + $0x28] sm:$0xff]  ;;  %v697_v29 = vld [vmem:[%s933_s8 + $0x60] sm:$0xff]  ;;  %v700_v44 = vld [vmem:[%s933_s8 + $0x18] sm:$0xff] }
  0x48   : > { %761 = vtanh.f32 %v379_v62  ;;  %v469_v16 = vmul.f32 %v467_v6, %v467_v6  ;;  %v980_v17 = vmax.f32 %v508_v8, %v971_v9  ;;  %v698_v32 = vld [vmem:[%s933_s8 + $0x68] sm:$0xff]  ;;  %v691_v52 = vld [vmem:[%s933_s8 + $0x30] sm:$0xff]  ;;  %v692_v55 = vld [vmem:[%s933_s8 + $0x38] sm:$0xff] }
  0x49   : > { %v754_v3 = vpop.eup %753  ;;  %v451_v4 = vadd.f32 %v450_v58, %v449_v54  ;;  %763 = vtanh.f32 %v380_v63  ;;  %v983_v21 = vmax.f32 %v509_v12, %v974_v10 }
  0x4a   : > { %v372_v11 = vadd.f32 1.0, %v754_v3  ;;  %v518_v25 = vsub.f32 %v955_v0, %v980_v17  ;;  %v470_v33 = vadd.f32 %v469_v16, %v468_v15  ;;  %v532_v47 = vsub.f32 %v961_v2, %v980_v17 }
  0x4b   : > { %v756_v13 = vpop.eup %755  ;;  %452 = vadd.xlane.f32.xlu1 %v451_v4  ;;  %v519_v30 = vsub.f32 %v958_v1, %v983_v21  ;;  %v533_v56 = vsub.f32 %v966_v7, %v983_v21 }
  0x4c   : > { %v758_v18 = vpop.eup %757  ;;  %v373_v19 = vadd.f32 1.0, %v756_v13  ;;  %v374_v20 = vmul.f32 0.5, %v372_v11  ;;  %v520_v41 = vmul.f32 1.442695, %v518_v25  ;;  %v534_v60 = vmul.f32 1.442695, %v532_v47 }
  0x4d   : > { %v760_v22 = vpop.eup %759  ;;  %v400_v24 = vadd.f32 1.0, %v758_v18  ;;  %v522_v46 = vmul.f32 1.442695, %v519_v30  ;;  %v536_v63 = vmul.f32 1.442695, %v533_v56  ;;  %v546_v13 = vsub.f32 %v971_v9, %v980_v17  ;;  %v708_v25 = vld [vmem:[%s933_s8 + $0x78] sm:$0xff] }
  0x4e   : > { %v375_v26 = vmul.f32 0.5, %v373_v19  ;;  %v407_v27 = vsub.f32 %v374_v20, %v689_v14  ;;  %v401_v28 = vadd.f32 1.0, %v760_v22  ;;  %v762_v34 = vpop.eup %761  ;;  %765 = vpow2.f32 %v520_v41 }
  0x4f   : > { %v402_v31 = vmul.f32 0.5, %v400_v24  ;;  %v764_v42 = vpop.eup %763  ;;  %v383_v45 = vadd.f32 1.0, %v762_v34  ;;  %767 = vpow2.f32 %v522_v46  ;;  %v547_v14 = vsub.f32 %v974_v10, %v983_v21  ;;  %v710_v46 = vld [vmem:[%s933_s8 + $0x88] sm:$0xff] }
  0x50   : > { %v408_v35 = vsub.f32 %v375_v26, %v690_v23  ;;  %v409_v36 = vmul.f32 %v407_v27, %v936_v37  ;;  %v403_v38 = vmul.f32 0.5, %v401_v28  ;;  %v384_v51 = vadd.f32 1.0, %v764_v42  ;;  %v707_v23 = vld [vmem:[%s933_s8 + $0x70] sm:$0xff] }
  0x51   : > { %v483_v43 = vsub.f32 %v402_v31, %v697_v29  ;;  %v385_v54 = vmul.f32 0.5, %v383_v45  ;;  %769 = vpow2.f32 %v534_v60  ;;  %v548_v18 = vmul.f32 1.442695, %v546_v13  ;;  %v709_v45 = vld [vmem:[%s933_s8 + $0x80] sm:$0xff] }
  0x52   : > { %v410_v48 = vmul.f32 %v408_v35, %v940_v40  ;;  %v411_v49 = vmul.f32 %v409_v36, %v409_v36  ;;  %v484_v50 = vsub.f32 %v403_v38, %v698_v32  ;;  %v386_v59 = vmul.f32 0.5, %v384_v51 }
  0x53   : > { %v488_v53 = vmul.f32 %v699_v39, %v483_v43  ;;  %471 = vadd.xlane.f32.xlu1 %v470_v33  ;;  %v426_v62 = vsub.f32 %v385_v54, %v691_v52  ;;  %771 = vpow2.f32 %v536_v63  ;;  %vm526_vm0 = vcmp.eq.f32.partialorder %v707_v23, 0.0 }
  0x54   : > { %v412_v57 = vmul.f32 %v410_v48, %v410_v48  ;;  %v489_v58 = vmul.f32 %v700_v44, %v484_v50  ;;  %v427_v5 = vsub.f32 %v386_v59, %v692_v55  ;;  %v766_v16 = vpop.eup %765  ;;  %773 = vpow2.f32 %v548_v18 }
  0x55   : > { %v490_v61 = vmul.f32 %v488_v53, %v488_v53  ;;  %v428_v6 = vmul.f32 %v426_v62, %v936_v37  ;;  %v550_v37 = vmul.f32 1.442695, %v547_v14  ;;  %v768_v19 = vpop.eup %767  ;;  %vm540_vm1 = vcmp.eq.f32.partialorder %v707_v23, 1.0 }
  0x56   : > { %v413_v3 = vadd.f32 %v412_v57, %v411_v49  ;;  %v491_v4 = vmul.f32 %v489_v58, %v489_v58  ;;  %v429_v11 = vmul.f32 %v427_v5, %v940_v40  ;;  %vm527_vm2 = vcmp.eq.f32.partialorder %v708_v25, 0.0 }
  0x57   : > { %v430_v12 = vmul.f32 %v428_v6, %v428_v6  ;;  %v770_v22 = vpop.eup %769  ;;  %775 = vpow2.f32 %v550_v37  ;;  %vm541_vm3 = vcmp.eq.f32.partialorder %v708_v25, 1.0  ;;  %v528_v31 = vsel %vm526_vm0, %v955_v0, 0.0 }
  0x58   : > { %414 = vadd.xlane.f32.xlu0 %v413_v3  ;;  %v492_v8 = vadd.f32 %v491_v4, %v490_v61  ;;  %v431_v15 = vmul.f32 %v429_v11, %v429_v11  ;;  %v538_v24 = vadd.f32 %v770_v22, %v766_v16  ;;  %v542_v32 = vsel %vm540_vm1, %v961_v2, 0.0 }
  0x59   : > { %v772_v40 = vpop.eup %771  ;;  %v529_v33 = vsel %vm527_vm2, %v958_v1, 0.0  ;;  %v543_v34 = vsel %vm541_vm3, %v966_v7, 0.0  ;;  %vm554_vm4 = vcmp.eq.f32.partialorder %v707_v23, 2.0  ;;  %vm555_vm5 = vcmp.eq.f32.partialorder %v708_v25, 2.0 }
  0x5a   : > { %493 = vadd.xlane.f32.xlu2 %v492_v8  ;;  %v432_v20 = vadd.f32 %v431_v15, %v430_v12  ;;  %v539_v26 = vadd.f32 %v772_v40, %v768_v19  ;;  %v774_v27 = vpop.eup %773  ;;  %v544_v35 = vadd.f32 %v542_v32, %v528_v31  ;;  %v545_v36 = vadd.f32 %v543_v34, %v529_v33 }
  0x5b   : > { %v552_v29 = vadd.f32 %v774_v27, %v538_v24  ;;  %v556_v38 = vsel %vm554_vm4, %v971_v9, 0.0  ;;  %v557_v39 = vsel %vm555_vm5, %v974_v10, 0.0 }
  0x5c   : > { %v558_v42 = vadd.f32 %v556_v38, %v544_v35  ;;  %v559_v43 = vadd.f32 %v557_v39, %v545_v36 }
  0x5d   : > { %v776_v28 = vpop.eup %775  ;;  %777 = vlog2.f32 %v552_v29 }
  0x5e   : > { %v553_v30 = vadd.f32 %v776_v28, %v539_v26 }
  0x60   : > { %433 = vadd.xlane.f32.xlu0 %v432_v20  ;;  %779 = vlog2.f32 %v553_v30 }
  0x63   : > { %v778_v41 = vpop.eup %777 }
  0x64   : > { %v564_v2 = vmul.f32 0.6931472, %v778_v41 }
  0x66   : > { %v780_v0 = vpop.eup %779  ;;  %v567_v1 = vadd.f32 %v564_v2, %v980_v17 }
  0x67   : > { %v566_v44 = vmul.f32 0.6931472, %v780_v0 }
  0x68   : > { %v569_v47 = vsub.f32 %v567_v1, %v558_v42 }
  0x69   : > { %v568_v7 = vadd.f32 %v566_v44, %v983_v21 }
  0x6a   : > { %v571_v49 = vmul.f32 %v709_v45, %v569_v47 }
  0x6b   : > { %v570_v48 = vsub.f32 %v568_v7, %v559_v43 }
  0x6d   : > { %v572_v50 = vmul.f32 %v710_v46, %v570_v48 }
  0x6f   : > { %v573_v51 = vadd.f32 %v572_v50, %v571_v49 }
  0x71   : > { %574 = vadd.xlane.f32.xlu2 %v573_v51 }
  0xbe   : > { %v453_v9 = vpop.xlane.xlu1 %452 }
  0xbf   : > { %v454_v52 = vrot.slane %v453_v9, 4 }
  0xc1   : > { %v455_v17 = vadd.f32 %v454_v52, %v453_v9 }
  0xc3   : > { %v456_v62 = vrot.slane %v455_v17, 2 }
  0xc5   : > { %v457_v12 = vadd.f32 %v456_v62, %v455_v17 }
  0xc6   : > { %v472_v10 = vpop.xlane.xlu1 %471 }
  0xc7   : > { %v473_v55 = vrot.slane %v472_v10, 4  ;;  %v458_v18 = vrot.slane %v457_v12, 1 }
  0xc9   : > { %v474_v60 = vadd.f32 %v473_v55, %v472_v10  ;;  %v459_v40 = vadd.f32 %v458_v18, %v457_v12 }
  0xcb   : > { %v415_v53 = vpop.xlane.xlu0 %414  ;;  %v475_v3 = vrot.slane %v474_v60, 2 }
  0xcc   : > { %v416_v54 = vrot.slane %v415_v53, 4 }
  0xcd   : > { %v494_v56 = vpop.xlane.xlu2 %493  ;;  %v476_v13 = vadd.f32 %v475_v3, %v474_v60 }
  0xce   : > { %v417_v57 = vadd.f32 %v416_v54, %v415_v53  ;;  %v495_v58 = vrot.slane %v494_v56, 4 }
  0xcf   : > { %v477_v19 = vrot.slane %v476_v13, 1 }
  0xd0   : > { %v418_v59 = vrot.slane %v417_v57, 2  ;;  %v496_v21 = vadd.f32 %v495_v58, %v494_v56 }
  0xd1   : > { %v478_v23 = vadd.f32 %v477_v19, %v476_v13 }
  0xd2   : > { %v419_v61 = vadd.f32 %v418_v59, %v417_v57  ;;  %v497_v6 = vrot.slane %v496_v21, 2 }
  0xd3   : > { %v434_v63 = vpop.xlane.xlu0 %433 }
  0xd4   : > { %v435_v4 = vrot.slane %v434_v63, 4  ;;  %v420_v5 = vrot.slane %v419_v61, 1  ;;  %v498_v15 = vadd.f32 %v497_v6, %v496_v21 }
  0xd6   : > { %v436_v8 = vadd.f32 %v435_v4, %v434_v63  ;;  %v421_v11 = vadd.f32 %v420_v5, %v419_v61  ;;  %v499_v20 = vrot.slane %v498_v15, 1 }
  0xd8   : > { %v437_v14 = vrot.slane %v436_v8, 2  ;;  %717 = vpush %v421_v11  ;;  %v500_v24 = vadd.f32 %v499_v20, %v498_v15 }
  0xda   : > { %v438_v16 = vadd.f32 %v437_v14, %v436_v8 }
  0xdc   : > { %v439_v37 = vrot.slane %v438_v16, 1 }
  0xde   : > { %v440_v22 = vadd.f32 %v439_v37, %v438_v16 }
  0xe0   : > { %719 = vpush %v440_v22 }
  0xe1   : > { %721 = vpush %v459_v40 }
  0xe2   : > { %723 = vpush %v478_v23 }
  0xe3   : > { %725 = vpush %v500_v24 }
  0xe4   : > { %v575_v25 = vpop.xlane.xlu2 %574 }
  0xe5   : > { %v576_v26 = vrot.slane %v575_v25, 4 }
  0xe7   : > { %v577_v27 = vadd.f32 %v576_v26, %v575_v25 }
  0xe9   : > { %v578_v28 = vrot.slane %v577_v27, 2 }
  0xeb   : > { %v579_v29 = vadd.f32 %v578_v28, %v577_v27 }
  0xed   : > { %v580_v30 = vrot.slane %v579_v29, 1 }
  0xef   : > { %v581_v31 = vadd.f32 %v580_v30, %v579_v29 }
  0xf1   : > { %727 = vpush %v581_v31 }
 0x109   : > { %s718_s9 = spop %717 }
 0x111   : > { %s720_s14 = spop %719 }
 0x112   : > { %s583_s15 = sadd.f32 %s720_s14, %s718_s9  ;;  %s722_s17 = spop %721 }
 0x113   : > { %s724_s19 = spop %723 }
 0x114   : > { %s584_s18 = sadd.f32 %s722_s17, %s583_s15  ;;  %s726_s21 = spop %725 }
 0x115   : > { %s587_s23 = smul.f32 0.5, %s726_s21 }
 0x116   : > { %s585_s20 = sadd.f32 %s724_s19, %s584_s18 }
 0x118   : > { %s586_s22 = smul.f32 0.5, %s585_s20 }
 0x11a   : > { %s588_s24 = sadd.f32 %s587_s23, %s586_s22 }
 0x122   : > { %s728_s26 = spop %727 }
 0x123   : > { %s589_s30 = sadd.f32 %s728_s26, %s588_s24 }
 0x125   : > { %v590_v32 = vstv %s589_s30 }
 0x126   : > { %591 = vst [vmem:[%s363_s29] sm:$0xff] %v590_v32 }
 0x127 PF: > { %p9_p9 = scmp.ge.s32.totalorder %s837_s13, 4   ;;  %s1041_s9 = smov %s799_s10 }
 0x128   : > { %s1042_s10 = smov %s846_s16  ;;  %s1043_s11 = smov %s837_s13 }
 0x129   :  { %11 = sbr.rel (!%p9_p9) target bundleno = 2 (0x2), region = 162 }

</bundles_post_ra>
